<compile_context>
chip_gen: v7x
topology: tpu7x:2x2x1
jax: 0.10.0
libtpu: 0.0.40
codegen_flags: <defaults>
</compile_context>

<pallas_src>
import jax
import jax.numpy as jnp
from jax import lax
from jax.experimental import pallas as pl
from jax.experimental.pallas import tpu as pltpu

# --- problem sizes (small, consistent with the module's forward) ---
B = 2                 # batch
D_IN = 32             # encoder input feature dim
N_VARS = 16           # number of ILP variables
M_LEARN = 4           # learned constraints (encoder)
M_KNOWN = 4           # known constraints (known_ab_encoder)
M_TOTAL = M_LEARN + M_KNOWN
COST_LOSS_WT = 0.3    # cost_loss_wt hyper-parameter (compile-time constant)

A_COLS = M_TOTAL * N_VARS          # 128: lane-dense [A_learn | A_known] slab
B_OFF = A_COLS                     # 128: start of [b_learn | b_known] block
C_OFF = A_COLS + M_TOTAL           # 136: start of c block
HEAD_COLS = A_COLS + M_TOTAL + N_VARS   # 152: total fused head width

_VMEM = pltpu.MemorySpace.VMEM
_SMEM = pltpu.MemorySpace.SMEM


# ---------------------------------------------------------------------------
# In-kernel helpers
# ---------------------------------------------------------------------------
def _selection_matrices():
    """In-register 0/1 matrices (iota compares; no HBM traffic) that turn the
    grouped reductions / broadcasts of the surrogate into tiny MXU matmuls,
    keeping everything 2-D with N_VARS (or M*N) on the lane axis. Only the two
    non-transposed variants are materialized; transposed uses go through
    lax.dot_general with swapped contraction dims."""
    # s_sel[m*N+n, m'] = (m == m')   : grouped sum over n (per constraint row)
    r = lax.broadcasted_iota(jnp.int32, (A_COLS, M_TOTAL), 0)
    c = lax.broadcasted_iota(jnp.int32, (A_COLS, M_TOTAL), 1)
    s_sel = (r // N_VARS == c).astype(jnp.float32)            # (M*N, M)
    # t_sel[n', m*N+n] = (n == n')   : broadcast a per-variable value across rows
    r = lax.broadcasted_iota(jnp.int32, (N_VARS, A_COLS), 0)
    c = lax.broadcasted_iota(jnp.int32, (N_VARS, A_COLS), 1)
    t_sel = (c % N_VARS == r).astype(jnp.float32)             # (N, M*N)
    return s_sel, t_sel


# ---------------------------------------------------------------------------
# Kernel 1: inference path (y is None) -> lane-dense (B, 152) head slab
# ---------------------------------------------------------------------------
def _encode_kernel(xa_ref, w_ref, out_ref):
    # Single fused head matmul: [A_learn|A_known | b_learn|b_known | c].
    # The torch.cat's of the reference module are free contiguous blocks here.
    out_ref[...] = jnp.dot(
        xa_ref[...], w_ref[...], preferred_element_type=jnp.float32
    )


# ---------------------------------------------------------------------------
# Kernel 2: training path -> fused encode + surrogate solve + weighted MSE loss
# ---------------------------------------------------------------------------
def _train_kernel(xa_ref, w_ref, y_ref, loss_ref):
    h = jnp.dot(xa_ref[...], w_ref[...], preferred_element_type=jnp.float32)  # (B, 152)
    a = h[:, :A_COLS]                  # (B, M*N)  flat constraint matrix a[b, m*N+n]
    b_rhs = h[:, B_OFF:C_OFF]          # (B, M)
    c = h[:, C_OFF:]                   # (B, N)
    y = y_ref[...]                     # (B, N)

    s_sel, t_sel = _selection_matrices()

    # TODO(synk): the real CombOptNet solver is a blackbox ILP (Gurobi) call with
    # no Pallas equivalent; a differentiable cost-descent step followed by one
    # row-normalized constraint-violation projection is used as the surrogate:
    #     yhat = -c - A^T [ relu(A(-c) - b) / (||a_m||^2 + eps) ]
    yhat0 = -c                                                             # (B, N)
    y0_exp = jnp.dot(yhat0, t_sel, preferred_element_type=jnp.float32)     # (B, M*N)

    # One stacked MXU pass computes both A @ yhat0 and ||a_m||^2.
    stacked = jnp.concatenate([a * y0_exp, a * a], axis=0)                 # (2B, M*N)
    sr = jnp.dot(stacked, s_sel, preferred_element_type=jnp.float32)       # (2B, M)
    s, row_sq = sr[:B], sr[B:]                                             # (B, M) each

    # relu violation scaled by approx reciprocal (EUP slot, off the VPU path)
    viol = jnp.maximum(s - b_rhs, 0.0) * pl.reciprocal(row_sq + 1e-6, approx=True)

    # transposed selection products via dot_general (no extra constant matrices)
    viol_exp = lax.dot_general(viol, s_sel, (((1,), (1,)), ((), ())),
                               preferred_element_type=jnp.float32)         # (B, M*N)
    proj = lax.dot_general(a * viol_exp, t_sel, (((1,), (1,)), ((), ())),
                           preferred_element_type=jnp.float32)             # (B, N)
    yhat = yhat0 - proj                                                    # (B, N)

    # fused weighted MSE: one cross-lane reduction instead of two
    per_elem = ((1.0 - COST_LOSS_WT) * (yhat - y) ** 2
                + COST_LOSS_WT * (yhat0 - y) ** 2)
    # scalar result -> SMEM output (no masked vector store / padded VMEM tile)
    loss_ref[0, 0] = jnp.mean(per_elem)


# ---------------------------------------------------------------------------
# Wrappers
# ---------------------------------------------------------------------------
def init_params(key):
    """Single fused linear head W_full, columns arranged
    [A_learn | A_known | b_learn | b_known | c]; bias folded in as last row
    (consumed via a ones-augmented x)."""
    return jax.random.normal(key, (D_IN + 1, HEAD_COLS), jnp.float32) * 0.1


def _augment(x):
    # bias fold: x_aug @ W_full == x @ W[:D_IN] + W[D_IN]
    return jnp.concatenate([x, jnp.ones((x.shape[0], 1), x.dtype)], axis=-1)


def _encode(x, w_full):
    slab = pl.pallas_call(
        _encode_kernel,
        out_shape=jax.ShapeDtypeStruct((B, HEAD_COLS), jnp.float32),
        in_specs=[pl.BlockSpec(memory_space=_VMEM)] * 2,
        out_specs=pl.BlockSpec(memory_space=_VMEM),
    )(_augment(x), w_full)
    # contiguous slices + row-major reshape only (module returns a as (B, M, N))
    a = slab[:, :A_COLS].reshape(B, M_TOTAL, N_VARS)
    b = slab[:, B_OFF:C_OFF]
    c = slab[:, C_OFF:]
    return a, b, c


def _train_loss(x, y, w_full):
    loss = pl.pallas_call(
        _train_kernel,
        out_shape=jax.ShapeDtypeStruct((1, 1), jnp.float32),
        in_specs=[pl.BlockSpec(memory_space=_VMEM)] * 3,
        out_specs=pl.BlockSpec(memory_space=_SMEM),
    )(_augment(x), w_full, y)
    return loss[0, 0]


def solver_core_forward(i, x, y, params):
    del i  # index `i` is unused by the reference forward pass
    if y is None:
        return _encode(x, params)
    return _train_loss(x, y, params)


# ---------------------------------------------------------------------------
# Pure-JAX reference (same synthetic encoder + surrogate) for validation
# ---------------------------------------------------------------------------
def _forward_ref(i, x, y, w_full):
    del i
    xa = jnp.concatenate([x, jnp.ones((x.shape[0], 1), x.dtype)], axis=-1)
    h = xa @ w_full
    a = h[:, :A_COLS].reshape(B, M_TOTAL, N_VARS)
    b = h[:, B_OFF:C_OFF]
    c = h[:, C_OFF:]
    if y is None:
        return a, b, c
    yhat0 = -c
    s = jnp.einsum("bmn,bn->bm", a, yhat0)
    row_sq = jnp.sum(a * a, axis=-1)
    viol = jnp.maximum(s - b, 0.0) / (row_sq + 1e-6)
    yhat = yhat0 - jnp.einsum("bmn,bm->bn", a, viol)
    solver_loss = jnp.mean((yhat - y) ** 2)
    cost_loss = jnp.mean((-c - y) ** 2)
    return (1.0 - COST_LOSS_WT) * solver_loss + COST_LOSS_WT * cost_loss


if __name__ == "__main__":
    key = jax.random.PRNGKey(0)
    kx, ky, kp = jax.random.split(key, 3)

    x = jax.random.normal(kx, (B, D_IN), jnp.float32)
    y = jax.random.randint(ky, (B, N_VARS), -2, 3).astype(jnp.float32)  # integer target
    params = init_params(kp)

    # path 1: y is None -> returns (a, b, c)
    a, b, c = solver_core_forward(0, x, None, params)
    jax.block_until_ready((a, b, c))
    assert a.shape == (B, M_TOTAL, N_VARS)
    assert b.shape == (B, M_TOTAL)
    assert c.shape == (B, N_VARS)
    a_r, b_r, c_r = _forward_ref(0, x, None, params)
    assert bool(jnp.allclose(a, a_r, rtol=5e-2, atol=5e-2))
    assert bool(jnp.allclose(b, b_r, rtol=5e-2, atol=5e-2))
    assert bool(jnp.allclose(c, c_r, rtol=5e-2, atol=5e-2))

    # path 2: training loss (single fused kernel, scalar loss in SMEM)
    loss = solver_core_forward(0, x, y, params)
    jax.block_until_ready(loss)
    assert loss.shape == () and bool(jnp.isfinite(loss))
    loss_r = _forward_ref(0, x, y, params)
    assert bool(jnp.allclose(loss, loss_r, rtol=5e-2, atol=5e-2))

    print("KERNEL_OK")
</pallas_src>

<mosaic_0001>
module attributes {stable_mosaic.version = 11 : i64} {
  func.func @_encode_kernel(%arg0: memref<2x33xf32, #tpu.memory_space<vmem>>, %arg1: memref<33x152xf32, #tpu.memory_space<vmem>>, %arg2: memref<2x152xf32, #tpu.memory_space<vmem>>) attributes {dimension_semantics = [], scalar_prefetch = 0 : i64, scratch_operands = 0 : i64, tpu.core_type = #tpu.core_type<tc>} {
    %c0 = arith.constant 0 : index
    %c0_0 = arith.constant 0 : index
    %0 = vector.load %arg0[%c0, %c0_0] : memref<2x33xf32, #tpu.memory_space<vmem>>, vector<2x33xf32>
    %c0_1 = arith.constant 0 : index
    %c0_2 = arith.constant 0 : index
    %1 = vector.load %arg1[%c0_1, %c0_2] : memref<33x152xf32, #tpu.memory_space<vmem>>, vector<33x152xf32>
    %cst = arith.constant dense<0.000000e+00> : vector<2x152xf32>
    %2 = tpu.matmul %0, %1, %cst {dimension_numbers = #tpu.dot_dimension_numbers<[1], [0], [0], [1], [0, 0, 1, 1], [], []>} : vector<2x33xf32>, vector<33x152xf32>, vector<2x152xf32> -> vector<2x152xf32>
    %c0_3 = arith.constant 0 : index
    %c0_4 = arith.constant 0 : index
    %3 = vector.load %arg2[%c0_3, %c0_4] : memref<2x152xf32, #tpu.memory_space<vmem>>, vector<2x152xf32>
    tpu.vector_store %arg2[%c0_3, %c0_4], %2 {strides = array<i32>} : memref<2x152xf32, #tpu.memory_space<vmem>>, vector<2x152xf32>,
    return
  }
}

</mosaic_0001>

<bundles_post_ra>
// kernel: tpu_custom_call.1
= control target key start
LH: loop header
LB: loop body
LE: loop exit
PB: predicated region body
PF: predicated region fallthrough
CT: control target
= control target key end

     0   :  { %7 = vsyncpa [#allocation3], 0  ;;  %s317_s0 = inlined_call_operand.hbm [shape: f32[2,33], index: 0, kind: input, shape index: {}]   ;;  %s318_s1 = inlined_call_operand.hbm [shape: f32[33,152], index: 1, kind: input, shape index: {}]   ;;  %s319_s2 = inlined_call_operand.hbm [shape: f32[2,152], index: 2, kind: output, shape index: {}]  }
   0x1   :  { %8 = vsyncpa [#allocation6], 0 }
   0x2   :  { %9 = vsyncpa [#allocation4], 0  ;;  %s252_s9 = smov [#allocation2]   ;;  %s253_s11 = smov [#allocation5]  }
   0x3   :  { %s16_s10 = sshll.u32 %s252_s9, 4  ;;  %s25_s12 = sshll.u32 %s253_s11, 4  ;;  %s17_s10 = int_to_ptr.vmem [resolvable:$true] %s16_s10  ;;  %s274_s12 = int_to_ptr.vmem [resolvable:$true] %s25_s12 }
   0x4   :  { %s180_s15 = scalar_lea.hbm %s317_s0, 32 }
   0x5   :  { %p181_p0 = scmp.ne.s32.totalorder %s317_s0, %s180_s15  ;;  %p184_p1 = scmp.lt.u32.totalorder %s180_s15, %s317_s0 }
   0x7   :  { %p186_p2 = pnand %p184_p1, %p181_p0 }
   0x9   :  { %189 = shalt.err (!%p186_p2)
}
   0xa   :  { %s190_s20 = scalar_lea.vmem %s17_s10, 32  ;;  %p195_p4 = scmp.lt.s32.totalorder %s17_s10, %s17_s10 }
   0xb   :  { %p191_p3 = scmp.ne.s32.totalorder %s17_s10, %s190_s20  ;;  %p196_p5 = scmp.lt.s32.totalorder %s190_s20, %s190_s20 }
   0xd   :  { %p197_p6 = por %p196_p5, %p195_p4 }
   0xf   :  { %p198_p7 = pnand %p197_p6, %p191_p3 }
  0x11   :  { %201 = shalt.err (!%p198_p7)
}
  0x12   :  { %19 = dma.hbm_to_vmem [thread:$0]  %s317_s0, 32, %s17_s10, [#allocation3]  }
  0x13   :  { %s202_s25 = scalar_lea.hbm %s318_s1, 1280 }
  0x14   :  { %p203_p8 = scmp.ne.s32.totalorder %s318_s1, %s202_s25  ;;  %p206_p9 = scmp.lt.u32.totalorder %s202_s25, %s318_s1 }
  0x16   :  { %p208_p10 = pnand %p206_p9, %p203_p8 }
  0x18   :  { %211 = shalt.err (!%p208_p10)
}
  0x19   :  { %s212_s30 = scalar_lea.vmem %s274_s12, 1280  ;;  %p217_p12 = scmp.lt.s32.totalorder %s274_s12, %s274_s12 }
  0x1a   :  { %p213_p11 = scmp.ne.s32.totalorder %s274_s12, %s212_s30  ;;  %p218_p13 = scmp.lt.s32.totalorder %s212_s30, %s212_s30 }
  0x1c   :  { %p219_p0 = por %p218_p13, %p217_p12 }
  0x1e   :  { %p220_p1 = pnand %p219_p0, %p213_p11 }
  0x20   :  { %223 = shalt.err (!%p220_p1)
}
  0x21   :  { %s254_s0 = smov 256   ;;  %s255_s3 = smov 16  }
  0x22   :  { %31 = dma.hbm_to_vmem [thread:$0]  %s318_s1, 1280, %s274_s12, [#allocation6], %s254_s0, %s254_s0, %s255_s3  }
  0x23   :  { %246 = dma.done.wait [#allocation3], 32  }
  0x24   :  { %247 = vsyncadd [#allocation3], 4294967264 }
  0x25   :  { %248 = dma.done.wait [#allocation6], 1280  }
  0x26   :  { %249 = vsyncadd [#allocation6], 4294966016  ;;  %v256_v0 = vmov 0.0   ;;  %v40_v1 = vld [vmem:[#allocation5 + $0x8] sm:$0xff]  ;;  %v42_v2 = vld [vmem:[#allocation5 + $0x18] sm:$0xff]  ;;  %vm53_vm0 = vcmask 1040384   ;;  %v137_v18 = vlaneseq }
  0x27   :  { %124 = vmatprep.mubr.f32.mxu0 %v256_v0  ;;  %v39_v3 = vld [vmem:[#allocation5] sm:$0xff]  ;;  %v165_v4 = vpack.c.bf16 %v42_v2, %v40_v1  ;;  %v41_v5 = vld [vmem:[#allocation5 + $0x10] sm:$0xff]  ;;  %v44_v6 = vld [vmem:[#allocation5 + $0x28] sm:$0xff]  ;;  %vm49_vm1 = vcmask 269312   ;;  %v257_v16 = vmov 1983009808  }
  0x28   :  { %v46_v7 = vld [vmem:[#allocation5 + $0x38] sm:$0xff]  ;;  %v167_v8 = vpack.c.bf16 %v41_v5, %v39_v3  ;;  %v43_v10 = vld [vmem:[#allocation5 + $0x20] sm:$0xff]  ;;  %v45_v11 = vld [vmem:[#allocation5 + $0x30] sm:$0xff]  ;;  %v135_v17 = vunpack.c.l.s4 %v257_v16  ;;  %v138_v20 = vshrl.u32 %v137_v18, 7  ;;  %vm142_vm2 = vcmask 1041408   ;;  %s258_s1 = smov [#allocation7]  }
  0x29   :  { %v169_v9 = vpack.c.bf16 %v46_v7, %v44_v6  ;;  %166 = vmatprep.subr.bf16.mxu0 %v165_v4  ;;  %v171_v12 = vpack.c.bf16 %v45_v11, %v43_v10  ;;  %v48_v13 = vld [vmem:[#allocation5 + $0x48] sm:$0x1]  ;;  %v47_v14 = vld [vmem:[#allocation5 + $0x40] sm:$0x1]  ;;  %v38_v15 = vld [vmem:[#allocation2] sm:$0x3] }
  0x2a   :  { %168 = vmatpush1.bf16.msra.mxu0 %v167_v8  ;;  %v136_v19 = vunpack.c.0.s8 %v135_v17  ;;  %vm143_vm3 = vcmask 191490   ;;  %s152_s6 = sshll.u32 %s258_s1, 4  ;;  %s153_s6 = int_to_ptr.vmem [resolvable:$true] %s152_s6 }
  0x2b   :  { %170 = vmatprep.subr.bf16.mxu0 %v169_v9  ;;  %vm144_vm4 = vmor %vm143_vm3, %vm142_vm2  ;;  %s224_s7 = scalar_lea.vmem %s153_s6, 64  ;;  %p229_p3 = scmp.lt.s32.totalorder %s153_s6, %s153_s6 }
  0x2c   :  { %v139_v22 = vsub.s32 %v136_v19, %v138_v20  ;;  %p225_p2 = scmp.ne.s32.totalorder %s153_s6, %s224_s7  ;;  %p230_p4 = scmp.lt.s32.totalorder %s224_s7, %s224_s7 }
  0x2e   :  { %172 = vmatpush1.bf16.msra.mxu0 %v171_v12  ;;  %p231_p5 = por %p230_p4, %p229_p3 }
  0x2f   :  { %162 = vmatprep.subr.msk.mxu0 %vm53_vm0, %v48_v13 }
  0x30   :  { %p232_p6 = pnand %p231_p5, %p225_p2 }
  0x32   :  { %163 = vmatpush1.msk.msra.mxu0 %vm53_vm0, %v47_v14 }
  0x33   :  { %164 = vmatmul.mubr.msk.f32.vlgmr.msra.gmra.mrb[0].mxu0 %vm49_vm1, %v38_v15 }
 0x106   :  { %v126_v21 = vpop.f32.mrb[0].mxu0 }
 0x107   :  { %v128_v23 = vpop.f32.mrb[1].mxu0 }
 0x108   :  { %v133_v24 = vcombine.low %v126_v21, %v128_v23 }
 0x10a   :  { %v140_v25 = vrot.slane %v133_v24, %v139_v22 }
 0x10c   :  { %145 = vst.msk [vmem:[#allocation7] sm:$0xf] %vm144_vm4, %v140_v25 }
 0x10d   :  { %235 = shalt.err (!%p232_p6)
}
 0x10e   :  { %s236_s10 = scalar_lea.hbm %s319_s2, 64 }
 0x10f   :  { %p237_p7 = scmp.ne.s32.totalorder %s319_s2, %s236_s10  ;;  %p240_p8 = scmp.lt.u32.totalorder %s236_s10, %s319_s2 }
 0x111   :  { %p242_p9 = pnand %p240_p8, %p237_p7 }
 0x113   :  { %245 = shalt.err (!%p242_p9)
}
 0x114   :  { %155 = dma.vmem_to_hbm [thread:$0]  %s153_s6, 64, %s319_s2, [#allocation4]  }
 0x115   :  { %250 = dma.done.wait [#allocation4], 64  }
 0x116   :  { %251 = vsyncadd [#allocation4], 4294967232 }
 0x117   :  { %159 = vsyncpa [#allocation3], 1 }
 0x118   :  { %160 = vsyncpa [#allocation6], 1 }
 0x119   :  { %161 = vsyncpa [#allocation4], 1 }

</bundles_post_ra>
